<compile_context>
chip_gen: v7x
topology: tpu7x:2x2x1
jax: 0.10.0
libtpu: 0.0.40
codegen_flags: <defaults>
</compile_context>

<pallas_src>
import jax
import jax.numpy as jnp
from jax.experimental import pallas as pl
from jax.experimental.pallas import tpu as pltpu


# ----------------------------------------------------------------------------
# Morton (Z-order) permutation: perm[morton(y, x)] = y * size + x
# ----------------------------------------------------------------------------
def _morton_perm(size):
    def morton(y, x):
        code, bit = 0, 0
        while (1 << bit) < size:
            code |= ((x >> bit) & 1) << (2 * bit)
            code |= ((y >> bit) & 1) << (2 * bit + 1)
            bit += 1
        return code

    perm = [0] * (size * size)
    for y in range(size):
        for x in range(size):
            perm[morton(y, x)] = y * size + x
    return perm


# ----------------------------------------------------------------------------
# Fused kernel factory: split-patches -> L+1 matmul/bias/ReLU -> joint -> scale
# ----------------------------------------------------------------------------
def _make_fused_kernel(num_rcs_layers, batch, hwc):
    def kernel(*refs):
        refs = list(refs)
        x0_ref, w0_ref, b0_ref = refs[0], refs[1], refs[2]
        pos = 3
        cdtype = x0_ref.dtype

        # ---- layer 0: (M0, K0) @ (K0, N0) + b, ReLU
        a = jnp.dot(x0_ref[...], w0_ref[...], preferred_element_type=jnp.float32)
        a = jnp.maximum(a + b0_ref[...], 0.0).astype(cdtype)

        # ---- recursion layers (2x2 / stride 2 convs) as 4 slab matmuls each.
        # Activation rows are Morton-ordered: row = (4*q + p) * batch + b, so the
        # rows for kernel position p are a contiguous slab -> no runtime transpose.
        for _ in range(num_rcs_layers):
            w_ref, b_ref = refs[pos], refs[pos + 1]
            pos += 2
            w = w_ref[...]                       # (4*cin, cout), slab p = rows [p*cin:(p+1)*cin]
            cin = a.shape[1]
            q = a.shape[0] // (4 * batch)
            acc = b_ref[...]                     # (1, cout); broadcasts on first add
            for p in range(4):
                if q == 1:
                    a_p = a[p * batch:(p + 1) * batch, :]
                else:
                    # TODO(synk): general L > 2 path; leading-dim regroup may relayout.
                    a_p = a.reshape(q, 4 * batch, cin)[:, p * batch:(p + 1) * batch, :]
                    a_p = a_p.reshape(q * batch, cin)
                acc = acc + jnp.dot(a_p, w[p * cin:(p + 1) * cin, :],
                                    preferred_element_type=jnp.float32)
            a = jnp.maximum(acc, 0.0).astype(cdtype)

        # ---- final 1x1 conv (pruned + 1/(H*W) folded) + ReLU + joint subtraction
        w_pn_ref, b_pn_ref, out_ref = refs[pos], refs[pos + 1], refs[pos + 2]
        z = jnp.dot(a, w_pn_ref[...], preferred_element_type=jnp.float32)
        z = jnp.maximum(z + b_pn_ref[...], 0.0)
        out_ref[...] = (z[:, :hwc] - z[:, hwc:]).astype(out_ref.dtype)

    return kernel


# ----------------------------------------------------------------------------
# Pure-JAX reference (unfused, PyTorch-layout weights) for correctness checking
# ----------------------------------------------------------------------------
def _conv_relu_nchw_ref(x, weight, bias, kh, kw):
    B, C, H, W = x.shape
    Cout = weight.shape[0]
    Ho, Wo = H // kh, W // kw
    p = x.reshape(B, C, Ho, kh, Wo, kw)
    p = jnp.transpose(p, (0, 2, 4, 1, 3, 5)).reshape(B * Ho * Wo, C * kh * kw)
    y = p @ weight.reshape(Cout, -1).T + bias
    y = jnp.maximum(y, 0.0).reshape(B, Ho, Wo, Cout)
    return jnp.transpose(y, (0, 3, 1, 2))


# ----------------------------------------------------------------------------
# Model
# ----------------------------------------------------------------------------
class ButterFlyNet2DCNNIDFTPallas:
    def __init__(self, in_channel, left_kx, right_kx, left_ky, right_ky,
                 height, width, layer_number, chebyshev_number, key,
                 compute_dtype=jnp.float32):
        # compute_dtype=jnp.bfloat16 halves weight/activation bytes and doubles MXU
        # throughput on v6e/v7x (f32 accumulation is kept either way); default f32
        # preserves the reference numerics exactly.
        self.C = in_channel
        self.H = height
        self.W = width
        self.L = layer_number
        self.cheb = chebyshev_number
        self.HWC = in_channel * height * width
        self.compute_dtype = compute_dtype
        fkx = right_kx - left_kx
        fky = right_ky - left_ky
        self.w_kx = int(fkx / 2 ** (layer_number - 1))
        self.w_ky = int(fky / 2 ** (layer_number - 1))
        ch2 = chebyshev_number ** 2
        C = in_channel

        self._raw = []  # PyTorch-layout weights kept only for the reference check

        # ---- layer 0: Conv2d(4C -> 16*ch2*C, kernel=(w_ky,w_kx), stride=same)
        N0 = 4 * 4 * ch2 * C
        Cin0 = 4 * C
        key, kw_, kb_ = jax.random.split(key, 3)
        W0 = jax.random.normal(kw_, (N0, Cin0, self.w_ky, self.w_kx), jnp.float32)
        b0 = jax.random.normal(kb_, (N0,), jnp.float32)
        self._raw.append((W0, b0, self.w_ky, self.w_kx))
        self.w0 = W0.reshape(N0, Cin0 * self.w_ky * self.w_kx).T.astype(compute_dtype)
        self.b0 = b0.reshape(1, N0)

        # ---- recursion layers: Conv2d(kernel=2, stride=2)
        # Pre-permute to (4*Cin, Cout): rows [p*Cin:(p+1)*Cin] = W[:, :, p//2, p%2].T
        self.rcs = []
        for lyr in range(1, layer_number):
            Cin = 4 * 4 ** lyr * ch2 * C
            Cout = 4 * 4 ** (lyr + 1) * ch2 * C
            key, kw_, kb_ = jax.random.split(key, 3)
            Wl = jax.random.normal(kw_, (Cout, Cin, 2, 2), jnp.float32)
            bl = jax.random.normal(kb_, (Cout,), jnp.float32)
            self._raw.append((Wl, bl, 2, 2))
            Wp = jnp.transpose(Wl, (2, 3, 1, 0)).reshape(4 * Cin, Cout).astype(compute_dtype)
            self.rcs.append((Wp, bl.reshape(1, Cout)))

        # ---- final 1x1 conv: prune to the channels joint() keeps (4c and 4c+2),
        #      fold the 1/(H*W) scale into weights + bias (ReLU commutes with it).
        Kf = 4 * 4 ** layer_number * ch2 * C
        Coutf = 4 * self.HWC
        key, kw_, kb_ = jax.random.split(key, 3)
        Wf = jax.random.normal(kw_, (Coutf, Kf), jnp.float32)
        bf = jax.random.normal(kb_, (Coutf,), jnp.float32)
        self._raw.append((Wf, bf, 1, 1))
        scale = 1.0 / (height * width)
        w_pos = Wf[0::4].T * scale                      # (Kf, HWC)
        w_neg = Wf[2::4].T * scale                      # (Kf, HWC)
        self.w_pn = jnp.concatenate([w_pos, w_neg], axis=1).astype(compute_dtype)
        self.b_pn = (jnp.concatenate([bf[0::4], bf[2::4]]) * scale).reshape(1, 2 * self.HWC)

    # ------------------------------------------------------------------
    @staticmethod
    def _split(x_complex):
        re = jnp.real(x_complex).astype(jnp.float32)
        im = jnp.imag(x_complex).astype(jnp.float32)
        B, C, H, W = x_complex.shape
        stacked = jnp.stack([re, im, -re, -im], axis=2).reshape(B, 4 * C, H, W)
        return jnp.maximum(stacked, 0.0)

    # ------------------------------------------------------------------
    def __call__(self, x_complex):
        B, C, H, W = x_complex.shape
        assert C == self.C

        # Tiny XLA prologue: split + layer-0 im2col with Morton row ordering
        # (rows = (morton(ho, wo), b), columns = (cin4, ky, kx)).
        s = self._split(x_complex)
        Ho, Wo = H // self.w_ky, W // self.w_kx
        assert Ho == Wo == 2 ** (self.L - 1)
        p = s.reshape(B, 4 * C, Ho, self.w_ky, Wo, self.w_kx)
        p = jnp.transpose(p, (2, 4, 0, 1, 3, 5))                 # Ho, Wo, B, 4C, ky, kx
        p = p.reshape(Ho * Wo, B, 4 * C * self.w_ky * self.w_kx)
        perm = jnp.asarray(_morton_perm(Ho), dtype=jnp.int32)
        p = p[perm]
        x0 = p.reshape(Ho * Wo * B, -1).astype(self.compute_dtype)

        args = [x0, self.w0, self.b0]
        for (w, b) in self.rcs:
            args += [w, b]
        args += [self.w_pn, self.b_pn]

        kernel = _make_fused_kernel(self.L - 1, B, self.HWC)
        in_specs = [pl.BlockSpec(a.shape, lambda i: (0, 0)) for a in args]

        total_bytes = sum(int(a.size) * a.dtype.itemsize for a in args) + B * self.HWC * 4
        vmem_limit = min(max(4 * total_bytes, 16 * 1024 * 1024), 64 * 1024 * 1024)

        out = pl.pallas_call(
            kernel,
            out_shape=jax.ShapeDtypeStruct((B, self.HWC), jnp.float32),
            grid_spec=pl.GridSpec(
                grid=(1,),
                in_specs=in_specs,
                out_specs=pl.BlockSpec((B, self.HWC), lambda i: (0, 0)),
            ),
            compiler_params=pltpu.CompilerParams(
                dimension_semantics=("arbitrary",),
                vmem_limit_bytes=vmem_limit,
            ),
        )(*args)
        return out.reshape(B, self.C, self.H, self.W)

    # ------------------------------------------------------------------
    def reference(self, x_complex):
        """Unfused pure-JAX reference matching the PyTorch module."""
        out = self._split(x_complex)
        for (w, b, kh, kw) in self._raw:
            out = _conv_relu_nchw_ref(out, w, b, kh, kw)
        B = x_complex.shape[0]
        y = out.reshape(B, self.HWC, 4)
        joint = y[:, :, 0] - y[:, :, 2]
        return joint.reshape(B, self.C, self.H, self.W) / (self.H * self.W)


# ----------------------------------------------------------------------------
if __name__ == "__main__":
    key = jax.random.PRNGKey(0)

    # Small config: in_channel=1, frequency box [0,8)x[0,8), H=W=8, L=2, cheb=2
    # -> w_ky = w_kx = 4; layer widths 4 -> 64 -> 256 -> 256 (pruned to 128).
    in_channel = 1
    height = width = 8
    layer_number = 2
    cheb = 2
    batch = 2

    key, kmodel, kre, kim = jax.random.split(key, 4)
    model = ButterFlyNet2DCNNIDFTPallas(
        in_channel, 0, 8, 0, 8, height, width, layer_number, cheb, kmodel
    )

    x_re = jax.random.normal(kre, (batch, in_channel, 8, 8), dtype=jnp.float32)
    x_im = jax.random.normal(kim, (batch, in_channel, 8, 8), dtype=jnp.float32)
    x = (x_re + 1j * x_im).astype(jnp.complex64)

    fwd = jax.jit(model.__call__)
    out = jax.block_until_ready(fwd(x))

    assert out.shape == (batch, in_channel, height, width)
    assert out.dtype == jnp.float32

    ref = jax.block_until_ready(model.reference(x))
    assert jnp.allclose(out, ref, rtol=2e-3, atol=2e-3), "fused kernel mismatch vs reference"

    print("KERNEL_OK")
</pallas_src>

<mosaic_0001>
module attributes {stable_mosaic.version = 11 : i64} {
  func.func @kernel(%arg0: i32, %arg1: memref<8x64xf32, #tpu.memory_space<vmem>>, %arg2: memref<64x64xf32, #tpu.memory_space<vmem>>, %arg3: memref<1x64xf32, #tpu.memory_space<vmem>>, %arg4: memref<256x256xf32, #tpu.memory_space<vmem>>, %arg5: memref<1x256xf32, #tpu.memory_space<vmem>>, %arg6: memref<256x128xf32, #tpu.memory_space<vmem>>, %arg7: memref<1x128xf32, #tpu.memory_space<vmem>>, %arg8: memref<2x64xf32, #tpu.memory_space<vmem>>) attributes {dimension_semantics = [#tpu.dimension_semantics<arbitrary>], iteration_bounds = array<i64: 1>, scalar_prefetch = 0 : i64, scratch_operands = 0 : i64, tpu.core_type = #tpu.core_type<tc>, window_params = [{pipeline_mode = #tpu.pipeline_mode<synchronous>, transform_indices = @transform_0, window_bounds = array<i64: 8, 64>}, {pipeline_mode = #tpu.pipeline_mode<synchronous>, transform_indices = @transform_1, window_bounds = array<i64: 64, 64>}, {pipeline_mode = #tpu.pipeline_mode<synchronous>, transform_indices = @transform_2, window_bounds = array<i64: 1, 64>}, {pipeline_mode = #tpu.pipeline_mode<synchronous>, transform_indices = @transform_3, window_bounds = array<i64: 256, 256>}, {pipeline_mode = #tpu.pipeline_mode<synchronous>, transform_indices = @transform_4, window_bounds = array<i64: 1, 256>}, {pipeline_mode = #tpu.pipeline_mode<synchronous>, transform_indices = @transform_5, window_bounds = array<i64: 256, 128>}, {pipeline_mode = #tpu.pipeline_mode<synchronous>, transform_indices = @transform_6, window_bounds = array<i64: 1, 128>}, {pipeline_mode = #tpu.pipeline_mode<synchronous>, transform_indices = @transform_7, window_bounds = array<i64: 2, 64>}]} {
    %c0 = arith.constant 0 : index
    %c0_0 = arith.constant 0 : index
    %0 = vector.load %arg1[%c0, %c0_0] : memref<8x64xf32, #tpu.memory_space<vmem>>, vector<8x64xf32>
    %c0_1 = arith.constant 0 : index
    %c0_2 = arith.constant 0 : index
    %1 = vector.load %arg2[%c0_1, %c0_2] : memref<64x64xf32, #tpu.memory_space<vmem>>, vector<64x64xf32>
    %cst = arith.constant dense<0.000000e+00> : vector<8x64xf32>
    %2 = tpu.matmul %0, %1, %cst {dimension_numbers = #tpu.dot_dimension_numbers<[1], [0], [0], [1], [0, 0, 1, 1], [], []>} : vector<8x64xf32>, vector<64x64xf32>, vector<8x64xf32> -> vector<8x64xf32>
    %c0_3 = arith.constant 0 : index
    %c0_4 = arith.constant 0 : index
    %3 = vector.load %arg3[%c0_3, %c0_4] : memref<1x64xf32, #tpu.memory_space<vmem>>, vector<1x64xf32>
    %4 = vector.broadcast %3 : vector<1x64xf32> to vector<8x64xf32>
    %5 = arith.addf %2, %4 : vector<8x64xf32>
    %cst_5 = arith.constant 0.000000e+00 : f32
    %6 = vector.broadcast %cst_5 : f32 to vector<8x64xf32>
    %7 = arith.maximumf %5, %6 : vector<8x64xf32>
    %c0_6 = arith.constant 0 : index
    %c0_7 = arith.constant 0 : index
    %8 = vector.load %arg4[%c0_6, %c0_7] : memref<256x256xf32, #tpu.memory_space<vmem>>, vector<256x256xf32>
    %c0_8 = arith.constant 0 : index
    %c0_9 = arith.constant 0 : index
    %9 = vector.load %arg5[%c0_8, %c0_9] : memref<1x256xf32, #tpu.memory_space<vmem>>, vector<1x256xf32>
    %10 = vector.extract_strided_slice %7 {offsets = [0, 0], sizes = [2, 64], strides = [1, 1]} : vector<8x64xf32> to vector<2x64xf32>
    %11 = vector.extract_strided_slice %8 {offsets = [0, 0], sizes = [64, 256], strides = [1, 1]} : vector<256x256xf32> to vector<64x256xf32>
    %cst_10 = arith.constant dense<0.000000e+00> : vector<2x256xf32>
    %12 = tpu.matmul %10, %11, %cst_10 {dimension_numbers = #tpu.dot_dimension_numbers<[1], [0], [0], [1], [0, 0, 1, 1], [], []>} : vector<2x64xf32>, vector<64x256xf32>, vector<2x256xf32> -> vector<2x256xf32>
    %13 = vector.broadcast %9 : vector<1x256xf32> to vector<2x256xf32>
    %14 = arith.addf %13, %12 : vector<2x256xf32>
    %15 = vector.extract_strided_slice %7 {offsets = [2, 0], sizes = [2, 64], strides = [1, 1]} : vector<8x64xf32> to vector<2x64xf32>
    %16 = vector.extract_strided_slice %8 {offsets = [64, 0], sizes = [64, 256], strides = [1, 1]} : vector<256x256xf32> to vector<64x256xf32>
    %cst_11 = arith.constant dense<0.000000e+00> : vector<2x256xf32>
    %17 = tpu.matmul %15, %16, %cst_11 {dimension_numbers = #tpu.dot_dimension_numbers<[1], [0], [0], [1], [0, 0, 1, 1], [], []>} : vector<2x64xf32>, vector<64x256xf32>, vector<2x256xf32> -> vector<2x256xf32>
    %18 = arith.addf %14, %17 : vector<2x256xf32>
    %19 = vector.extract_strided_slice %7 {offsets = [4, 0], sizes = [2, 64], strides = [1, 1]} : vector<8x64xf32> to vector<2x64xf32>
    %20 = vector.extract_strided_slice %8 {offsets = [128, 0], sizes = [64, 256], strides = [1, 1]} : vector<256x256xf32> to vector<64x256xf32>
    %cst_12 = arith.constant dense<0.000000e+00> : vector<2x256xf32>
    %21 = tpu.matmul %19, %20, %cst_12 {dimension_numbers = #tpu.dot_dimension_numbers<[1], [0], [0], [1], [0, 0, 1, 1], [], []>} : vector<2x64xf32>, vector<64x256xf32>, vector<2x256xf32> -> vector<2x256xf32>
    %22 = arith.addf %18, %21 : vector<2x256xf32>
    %23 = vector.extract_strided_slice %7 {offsets = [6, 0], sizes = [2, 64], strides = [1, 1]} : vector<8x64xf32> to vector<2x64xf32>
    %24 = vector.extract_strided_slice %8 {offsets = [192, 0], sizes = [64, 256], strides = [1, 1]} : vector<256x256xf32> to vector<64x256xf32>
    %cst_13 = arith.constant dense<0.000000e+00> : vector<2x256xf32>
    %25 = tpu.matmul %23, %24, %cst_13 {dimension_numbers = #tpu.dot_dimension_numbers<[1], [0], [0], [1], [0, 0, 1, 1], [], []>} : vector<2x64xf32>, vector<64x256xf32>, vector<2x256xf32> -> vector<2x256xf32>
    %26 = arith.addf %22, %25 : vector<2x256xf32>
    %cst_14 = arith.constant 0.000000e+00 : f32
    %27 = vector.broadcast %cst_14 : f32 to vector<2x256xf32>
    %28 = arith.maximumf %26, %27 : vector<2x256xf32>
    %c0_15 = arith.constant 0 : index
    %c0_16 = arith.constant 0 : index
    %29 = vector.load %arg6[%c0_15, %c0_16] : memref<256x128xf32, #tpu.memory_space<vmem>>, vector<256x128xf32>
    %cst_17 = arith.constant dense<0.000000e+00> : vector<2x128xf32>
    %30 = tpu.matmul %28, %29, %cst_17 {dimension_numbers = #tpu.dot_dimension_numbers<[1], [0], [0], [1], [0, 0, 1, 1], [], []>} : vector<2x256xf32>, vector<256x128xf32>, vector<2x128xf32> -> vector<2x128xf32>
    %c0_18 = arith.constant 0 : index
    %c0_19 = arith.constant 0 : index
    %31 = vector.load %arg7[%c0_18, %c0_19] : memref<1x128xf32, #tpu.memory_space<vmem>>, vector<1x128xf32>
    %32 = vector.broadcast %31 : vector<1x128xf32> to vector<2x128xf32>
    %33 = arith.addf %30, %32 : vector<2x128xf32>
    %cst_20 = arith.constant 0.000000e+00 : f32
    %34 = vector.broadcast %cst_20 : f32 to vector<2x128xf32>
    %35 = arith.maximumf %33, %34 : vector<2x128xf32>
    %36 = vector.extract_strided_slice %35 {offsets = [0, 0], sizes = [2, 64], strides = [1, 1]} : vector<2x128xf32> to vector<2x64xf32>
    %37 = vector.extract_strided_slice %35 {offsets = [0, 64], sizes = [2, 64], strides = [1, 1]} : vector<2x128xf32> to vector<2x64xf32>
    %38 = arith.subf %36, %37 : vector<2x64xf32>
    %c0_21 = arith.constant 0 : index
    %c0_22 = arith.constant 0 : index
    %39 = vector.load %arg8[%c0_21, %c0_22] : memref<2x64xf32, #tpu.memory_space<vmem>>, vector<2x64xf32>
    tpu.vector_store %arg8[%c0_21, %c0_22], %38 {strides = array<i32>} : memref<2x64xf32, #tpu.memory_space<vmem>>, vector<2x64xf32>,
    return
  }
  func.func @transform_0(%arg0: i32) -> (i32, i32) {
    %c0_i32 = arith.constant 0 : i32
    %c0_i32_0 = arith.constant 0 : i32
    %c0_i32_1 = arith.constant 0 : i32
    return %c0_i32, %c0_i32_0 : i32, i32
  }
  func.func @transform_1(%arg0: i32) -> (i32, i32) {
    %c0_i32 = arith.constant 0 : i32
    %c0_i32_0 = arith.constant 0 : i32
    %c0_i32_1 = arith.constant 0 : i32
    return %c0_i32, %c0_i32_0 : i32, i32
  }
  func.func @transform_2(%arg0: i32) -> (i32, i32) {
    %c0_i32 = arith.constant 0 : i32
    %c0_i32_0 = arith.constant 0 : i32
    %c0_i32_1 = arith.constant 0 : i32
    return %c0_i32, %c0_i32_0 : i32, i32
  }
  func.func @transform_3(%arg0: i32) -> (i32, i32) {
    %c0_i32 = arith.constant 0 : i32
    %c0_i32_0 = arith.constant 0 : i32
    %c0_i32_1 = arith.constant 0 : i32
    return %c0_i32, %c0_i32_0 : i32, i32
  }
  func.func @transform_4(%arg0: i32) -> (i32, i32) {
    %c0_i32 = arith.constant 0 : i32
    %c0_i32_0 = arith.constant 0 : i32
    %c0_i32_1 = arith.constant 0 : i32
    return %c0_i32, %c0_i32_0 : i32, i32
  }
  func.func @transform_5(%arg0: i32) -> (i32, i32) {
    %c0_i32 = arith.constant 0 : i32
    %c0_i32_0 = arith.constant 0 : i32
    %c0_i32_1 = arith.constant 0 : i32
    return %c0_i32, %c0_i32_0 : i32, i32
  }
  func.func @transform_6(%arg0: i32) -> (i32, i32) {
    %c0_i32 = arith.constant 0 : i32
    %c0_i32_0 = arith.constant 0 : i32
    %c0_i32_1 = arith.constant 0 : i32
    return %c0_i32, %c0_i32_0 : i32, i32
  }
  func.func @transform_7(%arg0: i32) -> (i32, i32) {
    %c0_i32 = arith.constant 0 : i32
    %c0_i32_0 = arith.constant 0 : i32
    %c0_i32_1 = arith.constant 0 : i32
    return %c0_i32, %c0_i32_0 : i32, i32
  }
}

</mosaic_0001>

<bundles_post_ra>
// kernel: custom-call.1
= control target key start
LH: loop header
LB: loop body
LE: loop exit
PB: predicated region body
PF: predicated region fallthrough
CT: control target
= control target key end

     0   :  { %s59_s0 = inlined_call_operand.hbm [shape: c64[2,1,8,8], index: 0, kind: input, shape index: {}]   ;;  %s60_s1 = inlined_call_operand.vmem [shape: f32[2,1,8,8], index: 1, kind: output, shape index: {}]  }
   0x1   :  { %s2_s8 = scalar_lea.hbm %s59_s0, 256 }
   0x2   :  { %3 = vsyncpa [#allocation0], 0  ;;  %s4_s11 = sshll.u32 %s60_s1, 4  ;;  %s34_s14 = scalar_lea.hbm %s59_s0, 512  ;;  %s5_s11 = int_to_ptr.vmem [resolvable:$true] %s4_s11 }
   0x3   :  { %p11_p0 = scmp.ne.s32.totalorder %s2_s8, %s34_s14  ;;  %p13_p1 = scmp.lt.u32.totalorder %s2_s8, %s59_s0 }
   0x4   :  { %p14_p2 = scmp.lt.u32.totalorder %s34_s14, %s34_s14  ;;  %p16_p4 = scmp.lt.u32.totalorder %s34_s14, %s2_s8 }
   0x6   :  { %p15_p3 = por %p14_p2, %p13_p1 }
   0x8   :  { %p17_p5 = por %p16_p4, %p15_p3 }
   0xa   :  { %p18_p6 = pnand %p17_p5, %p11_p0 }
   0xc   :  { %21 = shalt.err (!%p18_p6)  }
   0xd   :  { %s22_s17 = scalar_lea.vmem %s5_s11, 256  ;;  %p27_p8 = scmp.lt.s32.totalorder %s5_s11, %s5_s11 }
   0xe   :  { %p23_p7 = scmp.ne.s32.totalorder %s5_s11, %s22_s17  ;;  %p28_p9 = scmp.lt.s32.totalorder %s22_s17, %s22_s17 }
  0x10   :  { %p29_p10 = por %p28_p9, %p27_p8 }
  0x12   :  { %p30_p11 = pnand %p29_p10, %p23_p7 }
  0x14   :  { %33 = shalt.err (!%p30_p11)  }
  0x15   :  { %7 = dma.hbm_to_vmem [thread:$0]  %s2_s8, 256, %s5_s11, [#allocation0] }
  0x16   :  { %35 = dma.done.wait [#allocation0], 256  }
  0x17   :  { %36 = vsyncadd [#allocation0], 4294967040 }
  0x18   :  { %9 = vsyncpa [#allocation0], 1 }

// kernel: custom-call
= control target key start
LH: loop header
LB: loop body
LE: loop exit
PB: predicated region body
PF: predicated region fallthrough
CT: control target
= control target key end

     0   :  { %2 = vsyncpa [#allocation0], 0  ;;  %s61_s0 = inlined_call_operand.hbm [shape: c64[2,1,8,8], index: 0, kind: input, shape index: {}]   ;;  %s62_s1 = inlined_call_operand.vmem [shape: f32[2,1,8,8], index: 1, kind: output, shape index: {}]  }
   0x1   :  { %s3_s8 = sshll.u32 %s62_s1, 4  ;;  %s9_s11 = scalar_lea.hbm %s61_s0, 256  ;;  %s4_s8 = int_to_ptr.vmem [resolvable:$true] %s3_s8 }
   0x2   :  { %p10_p0 = scmp.ne.s32.totalorder %s61_s0, %s9_s11  ;;  %s11_s16 = scalar_lea.hbm %s61_s0, 512 }
   0x3   :  { %p12_p1 = scmp.lt.u32.totalorder %s11_s16, %s9_s11  ;;  %p13_p2 = scmp.lt.u32.totalorder %s9_s11, %s61_s0 }
   0x5   :  { %p14_p3 = por %p13_p2, %p12_p1 }
   0x7   :  { %p15_p4 = pnand %p14_p3, %p10_p0 }
   0x9   :  { %18 = shalt.err (!%p15_p4)  }
   0xa   :  { %s19_s1 = scalar_lea.vmem %s4_s8, 256  ;;  %p24_p6 = scmp.lt.s32.totalorder %s4_s8, %s4_s8 }
   0xb   :  { %p20_p5 = scmp.ne.s32.totalorder %s4_s8, %s19_s1  ;;  %p25_p7 = scmp.lt.s32.totalorder %s19_s1, %s19_s1 }
   0xd   :  { %p26_p8 = por %p25_p7, %p24_p6 }
   0xf   :  { %p27_p9 = pnand %p26_p8, %p20_p5 }
  0x11   :  { %30 = shalt.err (!%p27_p9)  }
  0x12   :  { %6 = dma.hbm_to_vmem [thread:$0]  %s61_s0, 256, %s4_s8, [#allocation0] }
  0x13   :  { %31 = dma.done.wait [#allocation0], 256  }
  0x14   :  { %32 = vsyncadd [#allocation0], 4294967040 }
  0x15   :  { %8 = vsyncpa [#allocation0], 1 }

// kernel: neg.2
= control target key start
LH: loop header
LB: loop body
LE: loop exit
PB: predicated region body
PF: predicated region fallthrough
CT: control target
= control target key end

     0   :  { %s40_s0 = inlined_call_operand.vmem [shape: f32[2,1,8,8], index: 0, kind: input, shape index: {}]   ;;  %s41_s1 = inlined_call_operand.vmem [shape: f32[2,1,8,8], index: 1, kind: output, shape index: {}]  }
   0x1   :  { %v2_v0 = vld [vmem:[%s40_s0] sm:$0xff]  ;;  %v16_v1 = vld [vmem:[%s40_s0 + $0x8] sm:$0xff] }
   0x2   :  { %v5_v2 = vxor.u32 2147483648, %v2_v0  ;;  %v12_v3 = vxor.u32 2147483648, %v16_v1 }
   0x4   :  { %7 = vst [vmem:[%s41_s1] sm:$0xff] %v5_v2  ;;  %17 = vst [vmem:[%s41_s1 + $0x8] sm:$0xff] %v12_v3 }

// kernel: a_call__.1
= control target key start
LH: loop header
LB: loop body
LE: loop exit
PB: predicated region body
PF: predicated region fallthrough
CT: control target
= control target key end

     0   :  { %v810_v0 = vmov 0.0|0.0   ;;  %vm811_vm0 = vmmov 0   ;;  %v812_v4 = vmov 0.0   ;;  %vm42_vm1 = vcmask 523264   ;;  %s1197_s1 = inlined_call_operand.vmem [shape: f32[64,64], index: 1, kind: input, shape index: {}]   ;;  %s1198_s3 = inlined_call_operand.vmem [shape: f32[256,256], index: 3, kind: input, shape index: {}]   ;;  %s1199_s0 = inlined_call_operand.vmem [shape: f32[8,64], index: 0, kind: input, shape index: {}]   ;;  %s1200_s5 = inlined_call_operand.vmem [shape: f32[256,128], index: 5, kind: input, shape index: {}]   ;;  %s1201_s2 = inlined_call_operand.vmem [shape: f32[1,64], index: 2, kind: input, shape index: {}]   ;;  %s1202_s4 = inlined_call_operand.vmem [shape: f32[1,256], index: 4, kind: input, shape index: {}]   ;;  %s1203_s6 = inlined_call_operand.vmem [shape: f32[1,128], index: 6, kind: input, shape index: {}]   ;;  %s1204_s7 = inlined_call_operand.vmem [shape: f32[2,64], index: 7, kind: output, shape index: {}]  }
   0x1   :  { %690 = vmatprep.subr.bf16.mxu0 %v810_v0  ;;  %v27_v1 = vld [vmem:[%s1197_s1] sm:$0xff]  ;;  %v28_v2 = vld [vmem:[%s1197_s1 + $0x8] sm:$0xff]  ;;  %v29_v3 = vld [vmem:[%s1197_s1 + $0x10] sm:$0xff]  ;;  %687 = vmatprep.mubr.msk.f32.mxu0 %vm811_vm0, %v812_v4  ;;  %vm614_vm2 = vcmask 517120  }
   0x2   :  { %v691_v5 = vpack.c.bf16 %v28_v2, %v27_v1  ;;  %v30_v6 = vld [vmem:[%s1197_s1 + $0x18] sm:$0xff]  ;;  %249 = vmatprep.mubr.f32.mxu1 %v812_v4  ;;  %v31_v7 = vld [vmem:[%s1197_s1 + $0x20] sm:$0xff]  ;;  %v32_v8 = vld [vmem:[%s1197_s1 + $0x28] sm:$0xff] }
   0x3   :  { %v694_v9 = vpack.c.bf16 %v30_v6, %v29_v3  ;;  %v118_v10 = vld [vmem:[%s1198_s3 + $0x8] sm:$0xff]  ;;  %v120_v11 = vld [vmem:[%s1198_s3 + $0x18] sm:$0xff]  ;;  %v117_v12 = vld [vmem:[%s1198_s3] sm:$0xff]  ;;  %v697_v23 = vpack.c.bf16 %v32_v8, %v31_v7 }
   0x4   :  { %692 = vmatpush3.bf16.msra.mxu0 %v691_v5  ;;  %v702_v13 = vpack.c.bf16 %v120_v11, %v118_v10  ;;  %v119_v14 = vld [vmem:[%s1198_s3 + $0x10] sm:$0xff]  ;;  %v122_v15 = vld [vmem:[%s1198_s3 + $0x28] sm:$0xff]  ;;  %v124_v16 = vld [vmem:[%s1198_s3 + $0x38] sm:$0xff] }
   0x5   :  { %693 = vmatprep.subr.bf16.mxu0 %v810_v0  ;;  %v704_v17 = vpack.c.bf16 %v119_v14, %v117_v12  ;;  %v706_v18 = vpack.c.bf16 %v124_v16, %v122_v15  ;;  %v121_v19 = vld [vmem:[%s1198_s3 + $0x20] sm:$0xff]  ;;  %v123_v20 = vld [vmem:[%s1198_s3 + $0x30] sm:$0xff]  ;;  %v126_v21 = vld [vmem:[%s1198_s3 + $0x48] sm:$0xff] }
   0x6   :  { %703 = vmatprep.subr.bf16.mxu1 %v702_v13  ;;  %v128_v22 = vld [vmem:[%s1198_s3 + $0x58] sm:$0xff]  ;;  %v33_v24 = vld [vmem:[%s1197_s1 + $0x30] sm:$0xff]  ;;  %v708_v25 = vpack.c.bf16 %v123_v20, %v121_v19  ;;  %v125_v28 = vld [vmem:[%s1198_s3 + $0x40] sm:$0xff] }
   0x7   :  { %705 = vmatpush1.bf16.msra.mxu1 %v704_v17  ;;  %v34_v26 = vld [vmem:[%s1197_s1 + $0x38] sm:$0xff]  ;;  %v710_v27 = vpack.c.bf16 %v128_v22, %v126_v21  ;;  %v127_v29 = vld [vmem:[%s1198_s3 + $0x50] sm:$0xff]  ;;  %v26_v32 = vld [vmem:[%s1199_s0] sm:$0xff] }
   0x8   :  { %695 = vmatpush3.bf16.msra.mxu0 %v694_v9  ;;  %707 = vmatprep.subr.bf16.mxu1 %v706_v18  ;;  %v700_v30 = vpack.c.bf16 %v34_v26, %v33_v24  ;;  %v712_v31 = vpack.c.bf16 %v127_v29, %v125_v28  ;;  %v130_v33 = vld [vmem:[%s1198_s3 + $0x68] sm:$0xff]  ;;  %v132_v34 = vld [vmem:[%s1198_s3 + $0x78] sm:$0xff]  ;;  %v129_v36 = vld [vmem:[%s1198_s3 + $0x60] sm:$0xff] }
   0x9   :  { %696 = vmatprep.subr.bf16.mxu0 %v810_v0  ;;  %v714_v35 = vpack.c.bf16 %v132_v34, %v130_v33  ;;  %v131_v37 = vld [vmem:[%s1198_s3 + $0x70] sm:$0xff]  ;;  %v134_v39 = vld [vmem:[%s1198_s3 + $0x88] sm:$0xff]  ;;  %v136_v40 = vld [vmem:[%s1198_s3 + $0x98] sm:$0xff] }
   0xa   :  { %v716_v38 = vpack.c.bf16 %v131_v37, %v129_v36  ;;  %v718_v41 = vpack.c.bf16 %v136_v40, %v134_v39  ;;  %v515_v42 = vld [vmem:[%s1200_s5 + $0x80] sm:$0xff]  ;;  %v516_v43 = vld [vmem:[%s1200_s5 + $0x88] sm:$0xff]  ;;  %v517_v47 = vld [vmem:[%s1200_s5 + $0x90] sm:$0xff] }
   0xb   :  { %709 = vmatpush1.bf16.msra.mxu1 %v708_v25  ;;  %v499_v44 = vld [vmem:[%s1200_s5] sm:$0xff]  ;;  %v766_v45 = vpack.c.bf16 %v516_v43, %v515_v42  ;;  %v500_v46 = vld [vmem:[%s1200_s5 + $0x8] sm:$0xff]  ;;  %v518_v48 = vld [vmem:[%s1200_s5 + $0x98] sm:$0xff] }
   0xc   :  { %698 = vmatpush3.bf16.msra.mxu0 %v697_v23  ;;  %711 = vmatprep.subr.bf16.mxu1 %v710_v27  ;;  %v768_v49 = vpack.c.bf16 %v500_v46, %v499_v44  ;;  %v770_v50 = vpack.c.bf16 %v518_v48, %v517_v47  ;;  %v501_v51 = vld [vmem:[%s1200_s5 + $0x10] sm:$0xff]  ;;  %v502_v52 = vld [vmem:[%s1200_s5 + $0x18] sm:$0xff]  ;;  %v519_v53 = vld [vmem:[%s1200_s5 + $0xa0] sm:$0xff] }
   0xd   :  { %699 = vmatprep.subr.bf16.mxu0 %v810_v0  ;;  %v520_v54 = vld [vmem:[%s1200_s5 + $0xa8] sm:$0xff]  ;;  %v772_v55 = vpack.c.bf16 %v502_v52, %v501_v51  ;;  %v503_v57 = vld [vmem:[%s1200_s5 + $0x20] sm:$0xff]  ;;  %v521_v59 = vld [vmem:[%s1200_s5 + $0xb0] sm:$0xff] }
   0xe   :  { %v774_v56 = vpack.c.bf16 %v520_v54, %v519_v53  ;;  %v504_v58 = vld [vmem:[%s1200_s5 + $0x28] sm:$0xff]  ;;  %v522_v60 = vld [vmem:[%s1200_s5 + $0xb8] sm:$0xff]  ;;  %v505_v63 = vld [vmem:[%s1200_s5 + $0x30] sm:$0xff] }
   0xf   :  { %713 = vmatpush1.bf16.msra.mxu1 %v712_v31  ;;  %v776_v61 = vpack.c.bf16 %v504_v58, %v503_v57  ;;  %v778_v62 = vpack.c.bf16 %v522_v60, %v521_v59  ;;  %v506_v0 = vld [vmem:[%s1200_s5 + $0x38] sm:$0xff]  ;;  %v523_v1 = vld [vmem:[%s1200_s5 + $0xc0] sm:$0xff]  ;;  %v524_v2 = vld [vmem:[%s1200_s5 + $0xc8] sm:$0xff] }
  0x10   :  { %701 = vmatpush3.bf16.msra.mxu0 %v700_v30  ;;  %715 = vmatprep.subr.bf16.mxu1 %v714_v35  ;;  %v780_v3 = vpack.c.bf16 %v506_v0, %v505_v63  ;;  %v782_v5 = vpack.c.bf16 %v524_v2, %v523_v1  ;;  %v507_v6 = vld [vmem:[%s1200_s5 + $0x40] sm:$0xff]  ;;  %v508_v7 = vld [vmem:[%s1200_s5 + $0x48] sm:$0xff]  ;;  %v525_v8 = vld [vmem:[%s1200_s5 + $0xd0] sm:$0xff] }
  0x11   :  { %767 = vmatprep.subr.bf16.mxu0 %v766_v45  ;;  %v526_v9 = vld [vmem:[%s1200_s5 + $0xd8] sm:$0xff]  ;;  %v784_v10 = vpack.c.bf16 %v508_v7, %v507_v6  ;;  %v509_v12 = vld [vmem:[%s1200_s5 + $0x50] sm:$0xff]  ;;  %v527_v14 = vld [vmem:[%s1200_s5 + $0xe0] sm:$0xff] }
  0x12   :  { %v786_v11 = vpack.c.bf16 %v526_v9, %v525_v8  ;;  %v510_v13 = vld [vmem:[%s1200_s5 + $0x58] sm:$0xff]  ;;  %v528_v15 = vld [vmem:[%s1200_s5 + $0xe8] sm:$0xff]  ;;  %v620_v18 = vld [vmem:[%s1201_s2] ss:$0 sm:$0xff] }
  0x13   :  { %688 = vmatmul.mubr.msk.f32.vlgmr.msra.gmra.mrb[0].mxu0 %vm42_vm1, %v26_v32  ;;  %717 = vmatpush1.bf16.msra.mxu1 %v716_v38  ;;  %v788_v16 = vpack.c.bf16 %v510_v13, %v509_v12  ;;  %v790_v17 = vpack.c.bf16 %v528_v15, %v527_v14  ;;  %v133_v19 = vld [vmem:[%s1198_s3 + $0x80] sm:$0xff]  ;;  %v135_v20 = vld [vmem:[%s1198_s3 + $0x90] sm:$0xff]  ;;  %v138_v22 = vld [vmem:[%s1198_s3 + $0xa8] sm:$0xff] }
  0x14   :  { %719 = vmatprep.subr.bf16.mxu1 %v718_v41  ;;  %769 = vmatpush3.bf16.msra.mxu0 %v768_v49  ;;  %v140_v23 = vld [vmem:[%s1198_s3 + $0xb8] sm:$0xff]  ;;  %v720_v26 = vpack.c.bf16 %v135_v20, %v133_v19  ;;  %v137_v29 = vld [vmem:[%s1198_s3 + $0xa0] sm:$0xff]  ;;  %v139_v30 = vld [vmem:[%s1198_s3 + $0xb0] sm:$0xff] }
  0x15   :  { %771 = vmatprep.subr.bf16.mxu0 %v770_v50  ;;  %v722_v28 = vpack.c.bf16 %v140_v23, %v138_v22  ;;  %v142_v31 = vld [vmem:[%s1198_s3 + $0xc8] sm:$0xff]  ;;  %v144_v32 = vld [vmem:[%s1198_s3 + $0xd8] sm:$0xff]  ;;  %v724_v33 = vpack.c.bf16 %v139_v30, %v137_v29  ;;  %v141_v35 = vld [vmem:[%s1198_s3 + $0xc0] sm:$0xff] }
  0x16   :  { %v726_v34 = vpack.c.bf16 %v144_v32, %v142_v31  ;;  %v143_v36 = vld [vmem:[%s1198_s3 + $0xd0] sm:$0xff]  ;;  %v146_v37 = vld [vmem:[%s1198_s3 + $0xe8] sm:$0xff]  ;;  %v148_v38 = vld [vmem:[%s1198_s3 + $0xf8] sm:$0xff] }
  0x17   :  { %v728_v39 = vpack.c.bf16 %v143_v36, %v141_v35  ;;  %v730_v40 = vpack.c.bf16 %v148_v38, %v146_v37  ;;  %v145_v41 = vld [vmem:[%s1198_s3 + $0xe0] sm:$0xff]  ;;  %v147_v42 = vld [vmem:[%s1198_s3 + $0xf0] sm:$0xff]  ;;  %v150_v43 = vld [vmem:[%s1198_s3 + $0x108] sm:$0xff] }
  0x18   :  { %773 = vmatpush3.bf16.msra.mxu0 %v772_v55  ;;  %v152_v44 = vld [vmem:[%s1198_s3 + $0x118] sm:$0xff]  ;;  %v732_v45 = vpack.c.bf16 %v147_v42, %v145_v41  ;;  %v149_v47 = vld [vmem:[%s1198_s3 + $0x100] sm:$0xff]  ;;  %v151_v48 = vld [vmem:[%s1198_s3 + $0x110] sm:$0xff] }
  0x19   :  { %775 = vmatprep.subr.bf16.mxu0 %v774_v56  ;;  %v734_v46 = vpack.c.bf16 %v152_v44, %v150_v43  ;;  %v154_v49 = vld [vmem:[%s1198_s3 + $0x128] sm:$0xff]  ;;  %v156_v50 = vld [vmem:[%s1198_s3 + $0x138] sm:$0xff]  ;;  %v736_v51 = vpack.c.bf16 %v151_v48, %v149_v47  ;;  %v153_v54 = vld [vmem:[%s1198_s3 + $0x120] sm:$0xff] }
  0x1a   :  { %v738_v53 = vpack.c.bf16 %v156_v50, %v154_v49  ;;  %v155_v55 = vld [vmem:[%s1198_s3 + $0x130] sm:$0xff]  ;;  %v158_v56 = vld [vmem:[%s1198_s3 + $0x148] sm:$0xff]  ;;  %v160_v57 = vld [vmem:[%s1198_s3 + $0x158] sm:$0xff] }
  0x1b   :  { %v740_v58 = vpack.c.bf16 %v155_v55, %v153_v54  ;;  %v742_v59 = vpack.c.bf16 %v160_v57, %v158_v56  ;;  %v157_v60 = vld [vmem:[%s1198_s3 + $0x140] sm:$0xff]  ;;  %v164_v63 = vld [vmem:[%s1198_s3 + $0x178] sm:$0xff]  ;;  %v175_v23 = vld [vmem:[%s1198_s3 + $0x1d0] sm:$0xff] }
  0x1c   :  { %777 = vmatpush3.bf16.msra.mxu0 %v776_v61  ;;  %v159_v61 = vld [vmem:[%s1198_s3 + $0x150] sm:$0xff]  ;;  %v161_v2 = vld [vmem:[%s1198_s3 + $0x160] sm:$0xff]  ;;  %v168_v6 = vld [vmem:[%s1198_s3 + $0x198] sm:$0xff] }
  0x1d   :  { %779 = vmatprep.subr.bf16.mxu0 %v778_v62  ;;  %v162_v62 = vld [vmem:[%s1198_s3 + $0x168] sm:$0xff]  ;;  %v744_v0 = vpack.c.bf16 %v159_v61, %v157_v60  ;;  %v165_v9 = vld [vmem:[%s1198_s3 + $0x180] sm:$0xff]  ;;  %v172_v12 = vld [vmem:[%s1198_s3 + $0x1b8] sm:$0xff] }
  0x1e   :  { %v746_v1 = vpack.c.bf16 %v164_v63, %v162_v62  ;;  %v176_v19 = vld [vmem:[%s1198_s3 + $0x1d8] sm:$0xff]  ;;  %v173_v22 = vld [vmem:[%s1198_s3 + $0x1c0] sm:$0xff]  ;;  %v179_v29 = vld [vmem:[%s1198_s3 + $0x1f0] sm:$0xff] }
  0x1f   :  { %v511_v32 = vld [vmem:[%s1200_s5 + $0x60] sm:$0xff]  ;;  %v529_v35 = vld [vmem:[%s1200_s5 + $0xf0] sm:$0xff]  ;;  %v514_v38 = vld [vmem:[%s1200_s5 + $0x78] sm:$0xff] }
  0x20   :  { %781 = vmatpush3.bf16.msra.mxu0 %v780_v3  ;;  %v163_v3 = vld [vmem:[%s1198_s3 + $0x170] sm:$0xff]  ;;  %v181_v43 = vld [vmem:[%s1202_s4] sm:$0x3]  ;;  %s813_s4 = smov 64  }
  0x21   :  { %783 = vmatprep.subr.bf16.mxu0 %v782_v5  ;;  %v166_v5 = vld [vmem:[%s1198_s3 + $0x188] sm:$0xff]  ;;  %v748_v7 = vpack.c.bf16 %v163_v3, %v161_v2  ;;  %v513_v37 = vld [vmem:[%s1200_s5 + $0x70] sm:$0xff]  ;;  %v626_v55 = vld [vmem:[%s1203_s6] ss:$0 sm:$0xff] }
  0x22   :  { %v750_v8 = vpack.c.bf16 %v168_v6, %v166_v5 }
  0x24   :  { %785 = vmatpush3.bf16.msra.mxu0 %v784_v10  ;;  %v167_v10 = vld [vmem:[%s1198_s3 + $0x190] sm:$0xff] }
  0x25   :  { %787 = vmatprep.subr.bf16.mxu0 %v786_v11  ;;  %v170_v11 = vld [vmem:[%s1198_s3 + $0x1a8] sm:$0xff]  ;;  %v752_v13 = vpack.c.bf16 %v167_v10, %v165_v9 }
  0x26   :  { %v754_v15 = vpack.c.bf16 %v172_v12, %v170_v11 }
  0x28   :  { %789 = vmatpush3.bf16.msra.mxu0 %v788_v16  ;;  %v169_v16 = vld [vmem:[%s1198_s3 + $0x1a0] sm:$0xff] }
  0x29   :  { %791 = vmatprep.subr.bf16.mxu0 %v790_v17  ;;  %v171_v17 = vld [vmem:[%s1198_s3 + $0x1b0] sm:$0xff] }
  0x2a   :  { %v756_v20 = vpack.c.bf16 %v171_v17, %v169_v16 }
  0xe6   :  { %v112_v21 = vpop.f32.mrb[0].mxu0 }
  0xe7   :  { %v113_v24 = vadd.f32 %v620_v18, %v112_v21  ;;  %v689_v25 = vpop.f32.mrb[1].mxu0  ;;  %v174_v18 = vld [vmem:[%s1198_s3 + $0x1c8] sm:$0xff] }
  0xe8   :  { %v758_v21 = vpack.c.bf16 %v176_v19, %v174_v18  ;;  %v180_v25 = vld [vmem:[%s1198_s3 + $0x1f8] sm:$0xff] }
  0xe9   :  { %v1031_v27 = vmax.f32 %v113_v24, 0.0  ;;  %v178_v24 = vld [vmem:[%s1198_s3 + $0x1e8] sm:$0xff] }
  0xeb   :  { %622 = vmatmul.mubr.msk.f32.vlgmr.msra.gmra.mrb[0].mxu1 %vm42_vm1, %v1031_v27  ;;  %v269_v52 = vrot.slane %v1031_v27, 2  ;;  %v345_v14 = vrot.slane %v1031_v27, 4  ;;  %v421_v31 = vrot.slane %v1031_v27, 6  ;;  %v530_v27 = vld [vmem:[%s1200_s5 + $0xf8] sm:$0xff] }
  0xec   :  { %721 = vmatpush1.bf16.msra.mxu1 %v720_v26  ;;  %336 = vmatprep.mubr.f32.mxu1 %v812_v4  ;;  %v762_v26 = vpack.c.bf16 %v180_v25, %v178_v24  ;;  %v794_v36 = vpack.c.bf16 %v530_v27, %v529_v35 }
  0xed   :  { %723 = vmatprep.subr.bf16.mxu1 %v722_v28  ;;  %v177_v28 = vld [vmem:[%s1198_s3 + $0x1e0] sm:$0xff] }
  0xee   :  { %v764_v30 = vpack.c.bf16 %v179_v29, %v177_v28 }
  0xf0   :  { %725 = vmatpush1.bf16.msra.mxu1 %v724_v33  ;;  %v512_v33 = vld [vmem:[%s1200_s5 + $0x68] sm:$0xff] }
  0xf1   :  { %727 = vmatprep.subr.bf16.mxu1 %v726_v34  ;;  %v792_v34 = vpack.c.bf16 %v512_v33, %v511_v32 }
  0xf3   :  { %793 = vmatpush3.bf16.msra.mxu0 %v792_v34 }
  0xf4   :  { %729 = vmatpush1.bf16.msra.mxu1 %v728_v39  ;;  %v796_v39 = vpack.c.bf16 %v514_v38, %v513_v37  ;;  %795 = vmatprep.subr.bf16.mxu0 %v794_v36 }
  0xf5   :  { %731 = vmatprep.subr.bf16.mxu1 %v730_v40  ;;  %v257_v40 = vlaneseq }
  0xf7   :  { %797 = vmatpush3.bf16.msra.mxu0 %v796_v39  ;;  %v258_v41 = vshrl.u32 %v257_v40, 7 }
  0xf8   :  { %733 = vmatpush1.bf16.msra.mxu1 %v732_v45 }
  0xf9   :  { %735 = vmatprep.subr.bf16.mxu1 %v734_v46  ;;  %v259_v42 = vsub.s32 0, %v258_v41  ;;  %v263_v44 = vsub.s32 1, %v258_v41 }
  0xfb   :  { %623 = vmatmul.mubr.msk.f32.vlgmr.msra.gmra.mrb[0].mxu1 %vm42_vm1, %v269_v52  ;;  %v260_v45 = vrot.slane %v181_v43, %v259_v42  ;;  %v264_v46 = vrot.slane %v181_v43, %v263_v44 }
  0xfc   :  { %737 = vmatpush1.bf16.msra.mxu1 %v736_v51  ;;  %412 = vmatprep.mubr.f32.mxu1 %v812_v4 }
  0xfd   :  { %739 = vmatprep.subr.bf16.mxu1 %v738_v53 }
 0x100   :  { %741 = vmatpush1.bf16.msra.mxu1 %v740_v58 }
 0x101   :  { %743 = vmatprep.subr.bf16.mxu1 %v742_v59 }
 0x104   :  { %745 = vmatpush1.bf16.msra.mxu1 %v744_v0 }
 0x105   :  { %747 = vmatprep.subr.bf16.mxu1 %v746_v1 }
 0x108   :  { %749 = vmatpush1.bf16.msra.mxu1 %v748_v7 }
 0x109   :  { %751 = vmatprep.subr.bf16.mxu1 %v750_v8 }
 0x10b   :  { %624 = vmatmul.mubr.msk.f32.vlgmr.msra.gmra.mrb[0].mxu1 %vm42_vm1, %v345_v14 }
 0x10c   :  { %753 = vmatpush1.bf16.msra.mxu1 %v752_v13  ;;  %488 = vmatprep.mubr.f32.mxu1 %v812_v4  ;;  %v760_v4 = vpack.c.bf16 %v175_v23, %v173_v22 }
 0x10d   :  { %755 = vmatprep.subr.bf16.mxu1 %v754_v15 }
 0x110   :  { %757 = vmatpush1.bf16.msra.mxu1 %v756_v20 }
 0x111   :  { %759 = vmatprep.subr.bf16.mxu1 %v758_v21 }
 0x114   :  { %761 = vmatpush1.bf16.msra.mxu1 %v760_v4 }
 0x115   :  { %763 = vmatprep.subr.bf16.mxu1 %v762_v26 }
 0x118   :  { %765 = vmatpush1.bf16.msra.mxu1 %v764_v30 }
 0x11b   :  { %625 = vmatmul.mubr.msk.f32.vlgmr.msra.gmra.mrb[0].mxu1 %vm42_vm1, %v421_v31 }
 0x1ee   :  { %v490_v47 = vpop.f32.mrb[0].mxu1 }
 0x1ef   :  { %v798_v48 = vadd.f32 %v490_v47, %v260_v45  ;;  %v492_v49 = vpop.f32.mrb[1].mxu1 }
 0x1f0   :  { %v799_v50 = vadd.f32 %v492_v49, %v264_v46 }
 0x1f1   :  { %v497_v52 = vmax.f32 %v798_v48, 0.0 }
 0x1f2   :  { %v498_v51 = vmax.f32 %v799_v50, 0.0 }
 0x1f4   :  { %602 = vmatprep.mubr.f32.mxu0 %v498_v51 }
 0x1f5   :  { %603 = vmatmul.mubr.f32.vlgmr.msra.gmra.mrb[2].mxu0 %v497_v52 }
 0x2c8   :  { %v668_v53 = vpop.f32.mrb[2].mxu0 }
 0x2c9   :  { %v669_v54 = vpop.f32.mrb[3].mxu0 }
 0x2ca   :  { %v670_v56 = vadd.f32 %v669_v54, %v668_v53 }
 0x2cc   :  { %v605_v57 = vadd.f32 %v670_v56, %v626_v55 }
 0x2ce   :  { %v608_v58 = vmax.f32 %v605_v57, 0.0 }
 0x2d0   :  { %610 = vrot.lane.b32.xlu0 %v608_v58, %s813_s4 }
 0x342   :  { %v611_v59 = vpop.permute.xlu0 %610 }
 0x343   :  { %v613_v60 = vsub.f32 %v608_v58, %v611_v59 }
 0x345   :  { %615 = vst.msk [vmem:[%s1204_s7] sm:$0x3] %vm614_vm2, %v613_v60 }

</bundles_post_ra>
